<compile_context>
chip_gen: v5e
topology: v5e:2x2
jax: 0.10.0
libtpu: 0.0.40
codegen_flags: <defaults>
</compile_context>

<pallas_src>
import jax
import jax.numpy as jnp
from jax.experimental import pallas as pl
from jax.experimental.pallas import tpu as pltpu

_LANES = 1024          # lane-dense width: multiple of 128
_ROW_ALIGN = 8         # sublane alignment
_MAX_ROW_TILE = 1024   # (1024, 1024) f32 = 4 MiB per tile


def _swish_kernel(x_ref, o_ref):
    # Compute in f32 for parity with torch.sigmoid.  Elementwise, so the
    # exp / divide are fully hidden under the HBM DMA.
    xf = x_ref[...].astype(jnp.float32)
    sig = 1.0 / (1.0 + jnp.exp(-xf))
    o_ref[...] = (xf * sig).astype(o_ref.dtype)


def swish(x: jax.Array) -> jax.Array:
    """Swish / SiLU: x * sigmoid(x). Matches Swish.forward (the PyTorch
    'inplace' flag is irrelevant for a functional implementation)."""
    orig_shape = x.shape
    n = x.size
    if n == 0:
        return x

    # ---- lane-dense repack: flatten, pad ONCE to a multiple of 8*lanes ----
    # swish(0) == 0, so zero padding is harmless; rows is then a multiple of
    # 8, keeping every block (8,128)-aligned without a second padding copy.
    flat = x.reshape(-1)
    lanes = _LANES if n >= _LANES else 128
    chunk = _ROW_ALIGN * lanes
    padded = pl.cdiv(n, chunk) * chunk
    if padded != n:
        flat = jnp.pad(flat, (0, padded - n))
    rows = padded // lanes                      # multiple of 8
    x2 = flat.reshape(rows, lanes)

    # ---- row tiling ----
    if rows <= _MAX_ROW_TILE:
        if rows >= 2 * _ROW_ALIGN:
            # Split into >= 2 blocks: feeds v7x's second TensorCore and
            # restores DMA/compute overlap for one-tile-sized activations.
            row_tile = pl.cdiv(pl.cdiv(rows, 2), _ROW_ALIGN) * _ROW_ALIGN
        else:
            row_tile = rows                     # tiny: single 8-row block
    else:
        row_tile = _MAX_ROW_TILE

    grid = (pl.cdiv(rows, row_tile),)           # partial last block is legal

    itemsize = jnp.dtype(x.dtype).itemsize
    out = pl.pallas_call(
        _swish_kernel,
        out_shape=jax.ShapeDtypeStruct((rows, lanes), x.dtype),
        grid=grid,
        in_specs=[pl.BlockSpec((row_tile, lanes), lambda i: (i, 0))],
        out_specs=pl.BlockSpec((row_tile, lanes), lambda i: (i, 0)),
        cost_estimate=pl.CostEstimate(
            flops=5 * padded,
            transcendentals=padded,
            bytes_accessed=2 * padded * itemsize,
        ),
        compiler_params=pltpu.CompilerParams(
            dimension_semantics=("parallel",),
            # 2 x 2 x 4 MiB double-buffered in+out = 16 MiB; 48 MiB limit is
            # within physical VMEM on v5e/v6e (128 MiB) and v7x (64 MiB).
            vmem_limit_bytes=48 << 20,
        ),
    )(x2)

    return out.reshape(-1)[:n].reshape(orig_shape)


if __name__ == "__main__":
    key = jax.random.PRNGKey(0)
    # PINN-style hidden activation: batch=8, hidden width = the script's nn=220.
    x = jax.random.normal(key, (8, 220), dtype=jnp.float32)

    y = swish(x)
    jax.block_until_ready(y)

    # Sanity check vs. pure-JAX reference (exact sigmoid now, tight tolerance).
    ref = x * jax.nn.sigmoid(x)
    assert y.shape == x.shape and y.dtype == x.dtype
    assert jnp.allclose(y, ref, atol=1e-5, rtol=1e-5)

    print("KERNEL_OK")
</pallas_src>

<mosaic_0001>
module attributes {stable_mosaic.version = 11 : i64} {
  func.func @_swish_kernel(%arg0: i32, %arg1: memref<8x1024xf32, #tpu.memory_space<vmem>>, %arg2: memref<8x1024xf32, #tpu.memory_space<vmem>>) attributes {dimension_semantics = [#tpu.dimension_semantics<parallel>], iteration_bounds = array<i64: 1>, scalar_prefetch = 0 : i64, scratch_operands = 0 : i64, tpu.core_type = #tpu.core_type<tc>, window_params = [{transform_indices = @transform_0, window_bounds = array<i64: 8, 1024>}, {transform_indices = @transform_1, window_bounds = array<i64: 8, 1024>}]} {
    %c0 = arith.constant 0 : index
    %c0_0 = arith.constant 0 : index
    %0 = vector.load %arg1[%c0, %c0_0] : memref<8x1024xf32, #tpu.memory_space<vmem>>, vector<8x1024xf32>
    %cst = arith.constant 0.000000e+00 : f32
    %1 = vector.broadcast %cst : f32 to vector<8x1024xf32>
    %2 = arith.subf %1, %0 : vector<8x1024xf32>
    %3 = math.exp %2 : vector<8x1024xf32>
    %cst_1 = arith.constant 1.000000e+00 : f32
    %4 = vector.broadcast %cst_1 : f32 to vector<8x1024xf32>
    %5 = arith.addf %4, %3 : vector<8x1024xf32>
    %cst_2 = arith.constant 1.000000e+00 : f32
    %6 = vector.broadcast %cst_2 : f32 to vector<8x1024xf32>
    %7 = arith.divf %6, %5 : vector<8x1024xf32>
    %8 = arith.mulf %0, %7 : vector<8x1024xf32>
    %c0_3 = arith.constant 0 : index
    %c0_4 = arith.constant 0 : index
    %9 = vector.load %arg2[%c0_3, %c0_4] : memref<8x1024xf32, #tpu.memory_space<vmem>>, vector<8x1024xf32>
    tpu.vector_store %arg2[%c0_3, %c0_4], %8 {strides = array<i32>} : memref<8x1024xf32, #tpu.memory_space<vmem>>, vector<8x1024xf32>,
    return
  }
  func.func @transform_0(%arg0: i32) -> (i32, i32) {
    %c0_i32 = arith.constant 0 : i32
    %c0_i32_0 = arith.constant 0 : i32
    return %arg0, %c0_i32 : i32, i32
  }
  func.func @transform_1(%arg0: i32) -> (i32, i32) {
    %c0_i32 = arith.constant 0 : i32
    %c0_i32_0 = arith.constant 0 : i32
    return %arg0, %c0_i32 : i32, i32
  }
}

</mosaic_0001>

<bundles_post_ra>
// kernel: tpu_custom_call.1
= control target key start
LH: loop header
LB: loop body
LE: loop exit
PB: predicated region body
PF: predicated region fallthrough
CT: control target
= control target key end

     0   :  { %6 = vsyncpa [#allocation3], 0  ;;  %s462_s0 = inlined_call_operand.hbm [shape: f32[8,1024], index: 0, kind: input, shape index: {}]   ;;  %s463_s1 = inlined_call_operand.hbm [shape: f32[8,1024], index: 1, kind: output, shape index: {}]  }
   0x1   :  { %7 = vsyncpa [#allocation4], 0  ;;  %s13_s8 = sshll.u32 %s462_s0, 4  ;;  %s302_s9 = smov [#allocation2]   ;;  %s14_s8 = int_to_ptr.hbm [resolvable:$true] %s13_s8 }
   0x2   :  { %s15_s10 = sshll.u32 %s302_s9, 4  ;;  %s16_s10 = int_to_ptr.vmem [resolvable:$true] %s15_s10 }
   0x3   :  { %18 = dma.hbm_to_vmem [thread:$0]  %s14_s8, 1024, %s16_s10, [#allocation3]  }
   0x4   :  { %298 = dma.done.wait [#allocation3], 1024  }
   0x5   :  { %299 = vsyncadd [#allocation3], 4294966272  ;;  %v317_v0 = vld [vmem:[#allocation2] sm:$0xff]  ;;  %v319_v1 = vld [vmem:[#allocation2 + $0x8] sm:$0xff]  ;;  %s303_s0 = smov [#allocation5]   ;;  %s206_s14 = sshll.u32 %s463_s1, 4  ;;  %s207_s14 = int_to_ptr.hbm [resolvable:$true] %s206_s14 }
   0x6   :  { %v321_v2 = vld [vmem:[#allocation2 + $0x10] sm:$0xff]  ;;  %v31_v3 = vsub.f32 0.0, %v317_v0  ;;  %v32_v4 = vsub.f32 0.0, %v319_v1  ;;  %v326_v6 = vld [vmem:[#allocation2 + $0x18] sm:$0xff]  ;;  %v328_v7 = vld [vmem:[#allocation2 + $0x20] sm:$0xff]  ;;  %s204_s11 = sshll.u32 %s303_s0, 4  ;;  %s205_s11 = int_to_ptr.vmem [resolvable:$true] %s204_s11 }
   0x7   :  { %v33_v5 = vsub.f32 0.0, %v321_v2  ;;  %v330_v8 = vld [vmem:[#allocation2 + $0x28] sm:$0xff]  ;;  %v34_v9 = vsub.f32 0.0, %v326_v6  ;;  %v35_v10 = vsub.f32 0.0, %v328_v7  ;;  %v335_v17 = vld [vmem:[#allocation2 + $0x30] sm:$0xff]  ;;  %v337_v19 = vld [vmem:[#allocation2 + $0x38] sm:$0xff] }
   0x8   :  { %v36_v11 = vsub.f32 0.0, %v330_v8  ;;  %v39_v12 = vmul.f32 1.442695, %v31_v3  ;;  %v41_v13 = vmul.f32 1.442695, %v32_v4  ;;  %v37_v20 = vsub.f32 0.0, %v335_v17 }
   0x9   :  { %v43_v14 = vmul.f32 1.442695, %v33_v5  ;;  %v45_v15 = vmul.f32 1.442695, %v34_v9  ;;  %v47_v16 = vmul.f32 1.442695, %v35_v10 }
   0xa   :  { %218 = vpow2.f32 %v39_v12  ;;  %v49_v18 = vmul.f32 1.442695, %v36_v11  ;;  %v38_v21 = vsub.f32 0.0, %v337_v19  ;;  %v51_v25 = vmul.f32 1.442695, %v37_v20 }
   0xb   :  { %220 = vpow2.f32 %v41_v13 }
   0xc   :  { %222 = vpow2.f32 %v43_v14  ;;  %v53_v28 = vmul.f32 1.442695, %v38_v21 }
   0xd   :  { %224 = vpow2.f32 %v45_v15 }
   0xe   :  { %226 = vpow2.f32 %v47_v16 }
   0xf   :  { %228 = vpow2.f32 %v49_v18 }
  0x10   :  { %v219_v22 = vpop.eup %218 }
  0x11   :  { %v221_v23 = vpop.eup %220  ;;  %v55_v24 = vadd.f32 1.0, %v219_v22 }
  0x12   :  { %v223_v26 = vpop.eup %222  ;;  %v341_v27 = vadd.f32 1.0, %v221_v23 }
  0x13   :  { %v225_v29 = vpop.eup %224  ;;  %230 = vrcp.f32 %v55_v24  ;;  %v72_v31 = vand.u32 2147483647, %v55_v24  ;;  %v74_v32 = vand.u32 2147483648, %v55_v24  ;;  %v345_v35 = vadd.f32 1.0, %v223_v26 }
  0x14   :  { %v227_v30 = vpop.eup %226  ;;  %232 = vrcp.f32 %v341_v27  ;;  %v87_v34 = vand.u32 2147483647, %v341_v27  ;;  %v347_v36 = vadd.f32 1.0, %v225_v29  ;;  %v89_v37 = vand.u32 2147483648, %v341_v27 }
  0x15   :  { %v229_v33 = vpop.eup %228  ;;  %234 = vpow2.f32 %v51_v25  ;;  %v350_v38 = vadd.f32 1.0, %v227_v30  ;;  %vm68_vm0 = vweird.f32 %v55_v24  ;;  %vm83_vm1 = vweird.f32 %v341_v27 }
  0x16   :  { %236 = vpow2.f32 %v53_v28  ;;  %v104_v39 = vand.u32 2147483648, %v345_v35  ;;  %vm355_vm2 = vcmp.eq.f32.partialorder %v72_v31, 8.507059e+37  ;;  %v75_v41 = vor.u32 1.1754944e-38, %v74_v32 }
  0x17   :  { %238 = vrcp.f32 %v345_v35  ;;  %v102_v42 = vand.u32 2147483647, %v345_v35  ;;  %v361_v43 = vadd.f32 1.0, %v229_v33  ;;  %vm363_vm3 = vcmp.eq.f32.partialorder %v87_v34, 8.507059e+37 }
  0x18   :  { %240 = vrcp.f32 %v347_v36  ;;  %v117_v46 = vand.u32 2147483647, %v347_v36  ;;  %v119_v47 = vand.u32 2147483648, %v347_v36  ;;  %v90_v50 = vor.u32 1.1754944e-38, %v89_v37 }
  0x19   :  { %v231_v44 = vpop.eup %230  ;;  %242 = vrcp.f32 %v350_v38  ;;  %vm98_vm4 = vweird.f32 %v345_v35  ;;  %vm113_vm5 = vweird.f32 %v347_v36  ;;  %v105_v53 = vor.u32 1.1754944e-38, %v104_v39 }
  0x1a   :  { %v233_v48 = vpop.eup %232  ;;  %v64_v49 = vmul.f32 %v231_v44, %v55_v24  ;;  %v132_v54 = vand.u32 2147483647, %v350_v38  ;;  %v134_v55 = vand.u32 2147483648, %v350_v38  ;;  %vm69_vm6 = vweird.f32 %v231_v44 }
  0x1b   :  { %v235_v51 = vpop.eup %234  ;;  %v79_v52 = vmul.f32 %v233_v48, %v341_v27  ;;  %vm375_vm7 = vcmp.eq.f32.partialorder %v102_v42, 8.507059e+37  ;;  %vm128_vm8 = vweird.f32 %v350_v38  ;;  %244 = vrcp.f32 %v361_v43  ;;  %vm394_vm13 = vmor %vm68_vm0, %vm69_vm6 }
  0x1c   :  { %v237_v56 = vpop.eup %236  ;;  %v65_v57 = vsub.f32 1.0, %v64_v49  ;;  %vm84_vm9 = vweird.f32 %v233_v48  ;;  %vm381_vm10 = vcmp.eq.f32.partialorder %v117_v46, 8.507059e+37  ;;  %v120_v62 = vor.u32 1.1754944e-38, %v119_v47 }
  0x1d   :  { %v239_v59 = vpop.eup %238  ;;  %v80_v60 = vsub.f32 1.0, %v79_v52  ;;  %vm143_vm11 = vweird.f32 %v361_v43  ;;  %vm387_vm12 = vcmp.eq.f32.partialorder %v132_v54, 8.507059e+37  ;;  %v147_v9 = vand.u32 2147483647, %v361_v43  ;;  %vm403_vm14 = vmor %vm83_vm1, %vm84_vm9 }
  0x1e   :  { %v241_v63 = vpop.eup %240  ;;  %v66_v3 = vmul.f32 %v231_v44, %v65_v57  ;;  %v94_v4 = vmul.f32 %v239_v59, %v345_v35  ;;  %v135_v14 = vor.u32 1.1754944e-38, %v134_v55  ;;  %v149_v15 = vand.u32 2147483648, %v361_v43 }
  0x1f   :  { %v243_v10 = vpop.eup %242  ;;  %v81_v12 = vmul.f32 %v233_v48, %v80_v60  ;;  %v109_v13 = vmul.f32 %v241_v63, %v347_v36  ;;  %vm99_vm15 = vweird.f32 %v239_v59  ;;  %vm114_vm0 = vweird.f32 %v241_v63 }
  0x20   :  { %v67_v16 = vadd.f32 %v231_v44, %v66_v3  ;;  %v95_v20 = vsub.f32 1.0, %v94_v4  ;;  %v124_v21 = vmul.f32 %v243_v10, %v350_v38  ;;  %vm129_vm6 = vweird.f32 %v243_v10  ;;  %vm416_vm1 = vmor %vm98_vm4, %vm99_vm15 }
  0x21   :  { %v82_v22 = vadd.f32 %v233_v48, %v81_v12  ;;  %v110_v23 = vsub.f32 1.0, %v109_v13  ;;  %v245_v24 = vpop.eup %244  ;;  %v61_v29 = vadd.f32 1.0, %v235_v51  ;;  %vm435_vm4 = vmor %vm128_vm8, %vm129_vm6  ;;  %v62_v46 = vadd.f32 1.0, %v237_v56 }
  0x22   :  { %v71_v25 = vsel %vm394_vm13, %v231_v44, %v67_v16  ;;  %v96_v26 = vmul.f32 %v239_v59, %v95_v20  ;;  %v125_v28 = vsub.f32 1.0, %v124_v21  ;;  %v139_v33 = vmul.f32 %v245_v24, %v361_v43 }
  0x23   :  { %v76_v27 = vsel %vm355_vm2, %v75_v41, %v71_v25  ;;  %v86_v30 = vsel %vm403_vm14, %v233_v48, %v82_v22  ;;  %v111_v32 = vmul.f32 %v241_v63, %v110_v23  ;;  %vm427_vm2 = vmor %vm113_vm5, %vm114_vm0  ;;  %246 = vrcp.f32 %v61_v29 }
  0x24   :  { %v183_v34 = vmul.f32 %v76_v27, %v317_v0  ;;  %v91_v37 = vsel %vm363_vm3, %v90_v50, %v86_v30  ;;  %v97_v39 = vadd.f32 %v239_v59, %v96_v26  ;;  %v126_v35 = vmul.f32 %v243_v10, %v125_v28 }
  0x25   :  { %v184_v41 = vmul.f32 %v91_v37, %v319_v1  ;;  %v112_v42 = vadd.f32 %v241_v63, %v111_v32  ;;  %v140_v44 = vsub.f32 1.0, %v139_v33  ;;  %vm144_vm3 = vweird.f32 %v245_v24 }
  0x26   :  { %191 = vst [vmem:[#allocation5] sm:$0xff] %v183_v34  ;;  %v101_v36 = vsel %vm416_vm1, %v239_v59, %v97_v39  ;;  %v127_v45 = vadd.f32 %v243_v10, %v126_v35  ;;  %vm145_vm5 = vmor %vm143_vm11, %vm144_vm3  ;;  %v150_v51 = vor.u32 1.1754944e-38, %v149_v15  ;;  %248 = vrcp.f32 %v62_v46 }
  0x27   :  { %192 = vst [vmem:[#allocation5 + $0x8] sm:$0xff] %v184_v41  ;;  %v106_v1 = vsel %vm375_vm7, %v105_v53, %v101_v36  ;;  %v116_v38 = vsel %vm427_vm2, %v241_v63, %v112_v42  ;;  %v141_v47 = vmul.f32 %v245_v24, %v140_v44  ;;  %vm148_vm7 = vcmp.eq.f32.partialorder %v147_v9, 8.507059e+37 }
  0x28   :  { %v185_v48 = vmul.f32 %v106_v1, %v321_v2  ;;  %v121_v49 = vsel %vm381_vm10, %v120_v62, %v116_v38  ;;  %v131_v50 = vsel %vm435_vm4, %v243_v10, %v127_v45  ;;  %v162_v59 = vand.u32 2147483647, %v61_v29 }
  0x29   :  { %v186_v52 = vmul.f32 %v121_v49, %v326_v6  ;;  %v136_v53 = vsel %vm387_vm12, %v135_v14, %v131_v50  ;;  %v142_v54 = vadd.f32 %v245_v24, %v141_v47  ;;  %v247_v56 = vpop.eup %246  ;;  %v164_v60 = vand.u32 2147483648, %v61_v29 }
  0x2a   :  { %193 = vst [vmem:[#allocation5 + $0x10] sm:$0xff] %v185_v48  ;;  %v187_v2 = vmul.f32 %v136_v53, %v328_v7  ;;  %v154_v58 = vmul.f32 %v247_v56, %v61_v29  ;;  %vm158_vm8 = vweird.f32 %v61_v29  ;;  %vm159_vm9 = vweird.f32 %v247_v56 }
  0x2b   :  { %194 = vst [vmem:[#allocation5 + $0x18] sm:$0xff] %v186_v52  ;;  %v146_v55 = vsel %vm145_vm5, %v245_v24, %v142_v54  ;;  %vm160_vm10 = vmor %vm158_vm8, %vm159_vm9  ;;  %vm163_vm11 = vcmp.eq.f32.partialorder %v162_v59, 8.507059e+37  ;;  %v165_v7 = vor.u32 1.1754944e-38, %v164_v60  ;;  %vm173_vm12 = vweird.f32 %v62_v46 }
  0x2c   :  { %195 = vst [vmem:[#allocation5 + $0x20] sm:$0xff] %v187_v2  ;;  %v151_v57 = vsel %vm148_vm7, %v150_v51, %v146_v55  ;;  %v155_v6 = vsub.f32 1.0, %v154_v58  ;;  %v249_v61 = vpop.eup %248  ;;  %v179_v3 = vand.u32 2147483648, %v62_v46  ;;  %v177_v9 = vand.u32 2147483647, %v62_v46 }
  0x2d   :  { %v188_v43 = vmul.f32 %v151_v57, %v330_v8  ;;  %v169_v63 = vmul.f32 %v249_v61, %v62_v46  ;;  %vm174_vm13 = vweird.f32 %v249_v61 }
  0x2e   :  { %v156_v62 = vmul.f32 %v247_v56, %v155_v6  ;;  %vm175_vm14 = vmor %vm173_vm12, %vm174_vm13  ;;  %v180_v12 = vor.u32 1.1754944e-38, %v179_v3  ;;  %vm178_vm15 = vcmp.eq.f32.partialorder %v177_v9, 8.507059e+37 }
  0x2f   :  { %196 = vst [vmem:[#allocation5 + $0x28] sm:$0xff] %v188_v43  ;;  %v170_v5 = vsub.f32 1.0, %v169_v63 }
  0x30   :  { %v157_v4 = vadd.f32 %v247_v56, %v156_v62 }
  0x31   :  { %v171_v10 = vmul.f32 %v249_v61, %v170_v5 }
  0x32   :  { %v161_v8 = vsel %vm160_vm10, %v247_v56, %v157_v4 }
  0x33   :  { %v166_v11 = vsel %vm163_vm11, %v165_v7, %v161_v8  ;;  %v172_v14 = vadd.f32 %v249_v61, %v171_v10 }
  0x34   :  { %v189_v13 = vmul.f32 %v166_v11, %v335_v17 }
  0x35   :  { %v176_v15 = vsel %vm175_vm14, %v249_v61, %v172_v14 }
  0x36   :  { %197 = vst [vmem:[#allocation5 + $0x30] sm:$0xff] %v189_v13  ;;  %v181_v16 = vsel %vm178_vm15, %v180_v12, %v176_v15 }
  0x37   :  { %v190_v18 = vmul.f32 %v181_v16, %v337_v19 }
  0x39   :  { %198 = vst [vmem:[#allocation5 + $0x38] sm:$0xff] %v190_v18 }
  0x3a   :  { %209 = dma.vmem_to_hbm [thread:$0]  %s205_s11, 1024, %s207_s14, [#allocation4]  }
  0x3b   :  { %300 = dma.done.wait [#allocation4], 1024  }
  0x3c   :  { %301 = vsyncadd [#allocation4], 4294966272 }
  0x3d   :  { %214 = vsyncpa [#allocation3], 1 }
  0x3e   :  { %215 = vsyncpa [#allocation4], 1 }

</bundles_post_ra>
